<compile_context>
chip_gen: v7x
topology: tpu7x:2x2x1
jax: 0.10.0
libtpu: 0.0.40
codegen_flags: <defaults>
</compile_context>

<pallas_src>
import functools

import jax
import jax.numpy as jnp
from jax import lax
from jax.experimental import pallas as pl
from jax.experimental.pallas import tpu as pltpu


def _round_up(v, m):
    return ((v + m - 1) // m) * m


# ---------------------------------------------------------------------------
# Kernel: one grid step == one chunk of Tt LSTM time steps.
# Refs:
#   zx_ref     [Tt, Bp, 4*Hp]  precomputed x-projection + bias (streamed)
#   wh_ref     [Hp, 4*Hp]      packed recurrent weights (resident across grid)
#   h0_ref     [Bp, Hp]        initial hidden state (read at chunk 0 only)
#   c0_ref     [Bp, Hp]        initial cell state   (read at chunk 0 only)
#   h_hist_ref [Tt, Bp, Hp]    h[t] output slab for this chunk (lane-dense)
#   c_ref      [Bp, Hp]        cell-state carry / final output (resident)
#   h_carry_ref[Bp, Hp]        VMEM scratch carrying h across chunks
# Static:
#   tt          chunk length (steps per grid iteration)
#   t_total     true (unpadded) sequence length
#   mask_tail   whether padded tail steps exist and must not touch the carry
# ---------------------------------------------------------------------------
def _lstm_chunk_kernel(zx_ref, wh_ref, h0_ref, c0_ref,
                       h_hist_ref, c_ref, h_carry_ref,
                       *, tt, t_total, mask_tail):
    tc = pl.program_id(0)
    Hp = c_ref.shape[-1]

    @pl.when(tc == 0)
    def _init():
        h_carry_ref[...] = h0_ref[...]
        c_ref[...] = c0_ref[...]

    def step(lt, carry):
        h, c = carry
        # Serial-path MXU work: only h @ Wh (bias + x-projection precomputed).
        z = jnp.dot(h, wh_ref[...],
                    preferred_element_type=jnp.float32) + zx_ref[lt]

        # Gate slices are 128-lane-tile aligned (Hp is a multiple of 128).
        # sigmoid(x) == 0.5 * (tanh(x/2) + 1): one EUP push instead of two.
        i = 0.5 * (jnp.tanh(0.5 * z[:, 0 * Hp:1 * Hp]) + 1.0)
        f = 0.5 * (jnp.tanh(0.5 * z[:, 1 * Hp:2 * Hp]) + 1.0)
        o = 0.5 * (jnp.tanh(0.5 * z[:, 2 * Hp:3 * Hp]) + 1.0)
        g = jnp.tanh(z[:, 3 * Hp:4 * Hp])

        c_next = f * c + i * g
        h_next = o * jnp.tanh(c_next)

        if mask_tail:
            # Padded tail steps must not advance the carried state.
            valid = (tc * tt + lt) < t_total
            h_next = jnp.where(valid, h_next, h)
            c_next = jnp.where(valid, c_next, c)

        # The only per-step vector store: lane-dense h history write.
        h_hist_ref[lt] = h_next
        return h_next, c_next

    h_fin, c_fin = lax.fori_loop(
        0, tt, step, (h_carry_ref[...], c_ref[...]), unroll=True)

    # Write carries once per chunk (not per step).
    h_carry_ref[...] = h_fin
    c_ref[...] = c_fin


# ---------------------------------------------------------------------------
# Parameter packing (run ONCE, outside the per-call jitted path):
# PyTorch-style per-gate Linears -> Wx [X, 4*Hp], Wh [Hp, 4*Hp], b [1, 4*Hp],
# gate order (i, f, o, g), each gate in its own 128-aligned column block.
# ---------------------------------------------------------------------------
def pack_params(wx, wh, b, x_features, hidden_features):
    X, H = x_features, hidden_features
    Hp = _round_up(H, 128)
    wx_p = jnp.zeros((X, 4 * Hp), jnp.float32)
    wh_p = jnp.zeros((Hp, 4 * Hp), jnp.float32)
    b_p = jnp.zeros((1, 4 * Hp), jnp.float32)
    for k in range(4):
        wx_p = wx_p.at[:, k * Hp:k * Hp + H].set(wx[:, k * H:(k + 1) * H])
        wh_p = wh_p.at[:H, k * Hp:k * Hp + H].set(wh[:, k * H:(k + 1) * H])
        b_p = b_p.at[0, k * Hp:k * Hp + H].set(b[0, k * H:(k + 1) * H])
    return wx_p, wh_p, b_p


# ---------------------------------------------------------------------------
# Fused-sequence wrapper: x_seq [T, B, X], h0/c0 [B, H], packed params ->
# (h_hist [T, B, H], c_final [B, H]).  The recurrent weights are loaded into
# VMEM once for the whole sequence; the input projection runs as a single
# large matmul outside the serial loop.
# ---------------------------------------------------------------------------
@jax.jit
def lstm_sequence(x_seq, h0, c0, wx_p, wh_p, b_p):
    T, B, X = x_seq.shape
    H = h0.shape[-1]
    Hp, G4 = wh_p.shape                      # G4 == 4 * Hp
    Bp = _round_up(B, 8)

    TT = 8                                   # time-chunk size (unrolled)
    Tt = min(TT, T)
    Tp = _round_up(T, Tt)
    n_chunks = Tp // Tt
    mask_tail = (Tp != T)

    # Non-recurrent projection + bias folding: one MXU-friendly [T*B, X] matmul.
    zx = (x_seq.reshape(T * B, X) @ wx_p + b_p).reshape(T, B, G4)
    zx_p = jnp.zeros((Tp, Bp, G4), jnp.float32).at[:T, :B, :].set(zx)

    h_p = jnp.zeros((Bp, Hp), jnp.float32).at[:B, :H].set(h0)
    c_p = jnp.zeros((Bp, Hp), jnp.float32).at[:B, :H].set(c0)

    kernel = functools.partial(_lstm_chunk_kernel,
                               tt=Tt, t_total=T, mask_tail=mask_tail)

    h_hist, c_last = pl.pallas_call(
        kernel,
        out_shape=(
            jax.ShapeDtypeStruct((Tp, Bp, Hp), jnp.float32),
            jax.ShapeDtypeStruct((Bp, Hp), jnp.float32),
        ),
        grid_spec=pltpu.PrefetchScalarGridSpec(
            num_scalar_prefetch=0,
            grid=(n_chunks,),
            in_specs=[
                pl.BlockSpec((Tt, Bp, G4), lambda t: (t, 0, 0)),   # zx chunk
                pl.BlockSpec((Hp, G4), lambda t: (0, 0)),          # Wh (resident)
                pl.BlockSpec((Bp, Hp), lambda t: (0, 0)),          # h0
                pl.BlockSpec((Bp, Hp), lambda t: (0, 0)),          # c0
            ],
            out_specs=(
                pl.BlockSpec((Tt, Bp, Hp), lambda t: (t, 0, 0)),   # h history
                pl.BlockSpec((Bp, Hp), lambda t: (0, 0)),          # c carry/final
            ),
            scratch_shapes=[pltpu.VMEM((Bp, Hp), jnp.float32)],    # h carry
        ),
        compiler_params=pltpu.CompilerParams(
            dimension_semantics=("arbitrary",)),
    )(zx_p, wh_p, h_p, c_p)

    return h_hist[:T, :B, :H], c_last[:B, :H]


def lstm_cell(x, h, c, wx_p, wh_p, b_p):
    """Single cell (matches TextLSTMUnit.forward): returns (h_next, h_next, c_next)."""
    h_hist, c_next = lstm_sequence(x[None], h, c, wx_p, wh_p, b_p)
    h_next = h_hist[0]
    return h_next, h_next, c_next


# ---------------------------------------------------------------------------
# Parameter init mimicking nn.Linear's U(-1/sqrt(in), 1/sqrt(in)); unpacked
# weights stored as Wx [X, 4H], Wh [H, 4H], bias [1, 4H], gate order i,f,o,g.
# ---------------------------------------------------------------------------
def init_params(key, x_features, hidden_features):
    keys = jax.random.split(key, 16)
    H, X = hidden_features, x_features

    def lin(k_w, k_b, in_f):
        bound = 1.0 / jnp.sqrt(jnp.float32(in_f))
        w = jax.random.uniform(k_w, (in_f, H), jnp.float32, -bound, bound)
        bb = jax.random.uniform(k_b, (H,), jnp.float32, -bound, bound)
        return w, bb

    w_ii, b_ii = lin(keys[0], keys[1], X)
    w_hi, b_hi = lin(keys[2], keys[3], H)
    w_if, b_if = lin(keys[4], keys[5], X)
    w_hf, b_hf = lin(keys[6], keys[7], H)
    w_io, b_io = lin(keys[8], keys[9], X)
    w_ho, b_ho = lin(keys[10], keys[11], H)
    w_ig, b_ig = lin(keys[12], keys[13], X)
    w_hg, b_hg = lin(keys[14], keys[15], H)

    wx = jnp.concatenate([w_ii, w_if, w_io, w_ig], axis=1)          # [X, 4H]
    wh = jnp.concatenate([w_hi, w_hf, w_ho, w_hg], axis=1)          # [H, 4H]
    b = jnp.concatenate([b_ii + b_hi, b_if + b_hf,
                         b_io + b_ho, b_ig + b_hg])[None, :]        # [1, 4H]
    return wx, wh, b


def reference_cell(x, h, c, wx, wh, b):
    """Pure-JAX reference mirroring the PyTorch forward."""
    H = h.shape[-1]
    z = x @ wx + h @ wh + b
    i = jax.nn.sigmoid(z[:, 0 * H:1 * H])
    f = jax.nn.sigmoid(z[:, 1 * H:2 * H])
    o = jax.nn.sigmoid(z[:, 2 * H:3 * H])
    g = jnp.tanh(z[:, 3 * H:4 * H])
    c_next = f * c + i * g
    h_next = o * jnp.tanh(c_next)
    return h_next, h_next, c_next


if __name__ == "__main__":
    B, X, H, T = 8, 16, 32, 8

    key = jax.random.PRNGKey(0)
    kx, kh, kc, kp = jax.random.split(key, 4)
    x_seq = jax.random.normal(kx, (T, B, X), jnp.float32)
    h0 = jax.random.normal(kh, (B, H), jnp.float32)
    c0 = jax.random.normal(kc, (B, H), jnp.float32)
    wx, wh, b = init_params(kp, X, H)

    # Pack once, outside the per-call path (perf feedback #9).
    wx_p, wh_p, b_p = pack_params(wx, wh, b, X, H)

    # --- single-cell forward (matches TextLSTMUnit.forward exactly) ---------
    h1, h2, c1 = lstm_cell(x_seq[0], h0, c0, wx_p, wh_p, b_p)
    jax.block_until_ready((h1, h2, c1))

    rh1, _, rc1 = reference_cell(x_seq[0], h0, c0, wx, wh, b)
    assert jnp.allclose(h1, rh1, atol=1e-5, rtol=1e-5)
    assert jnp.allclose(c1, rc1, atol=1e-5, rtol=1e-5)
    assert jnp.array_equal(h1, h2)

    # --- fused multi-step recurrence (same cell applied T times) ------------
    h_hist, c_last = lstm_sequence(x_seq, h0, c0, wx_p, wh_p, b_p)
    jax.block_until_ready((h_hist, c_last))

    rh, rc = h0, c0
    ref_hist = []
    for t in range(T):
        rh, _, rc = reference_cell(x_seq[t], rh, rc, wx, wh, b)
        ref_hist.append(rh)
    ref_hist = jnp.stack(ref_hist)
    assert jnp.allclose(h_hist, ref_hist, atol=1e-4, rtol=1e-4)
    assert jnp.allclose(c_last, rc, atol=1e-4, rtol=1e-4)

    print("KERNEL_OK")
</pallas_src>

<mosaic_0001>
module attributes {stable_mosaic.version = 11 : i64} {
  func.func @_lstm_chunk_kernel(%arg0: i32, %arg1: memref<1x8x512xf32, #tpu.memory_space<vmem>>, %arg2: memref<128x512xf32, #tpu.memory_space<vmem>>, %arg3: memref<8x128xf32, #tpu.memory_space<vmem>>, %arg4: memref<8x128xf32, #tpu.memory_space<vmem>>, %arg5: memref<1x8x128xf32, #tpu.memory_space<vmem>>, %arg6: memref<8x128xf32, #tpu.memory_space<vmem>>, %arg7: memref<8x128xf32, #tpu.memory_space<vmem>>) attributes {dimension_semantics = [#tpu.dimension_semantics<arbitrary>], iteration_bounds = array<i64: 1>, scalar_prefetch = 0 : i64, scratch_operands = 1 : i64, tpu.core_type = #tpu.core_type<tc>, window_params = [{transform_indices = @transform_0, window_bounds = array<i64: 1, 8, 512>}, {pipeline_mode = #tpu.pipeline_mode<synchronous>, transform_indices = @transform_1, window_bounds = array<i64: 128, 512>}, {pipeline_mode = #tpu.pipeline_mode<synchronous>, transform_indices = @transform_2, window_bounds = array<i64: 8, 128>}, {pipeline_mode = #tpu.pipeline_mode<synchronous>, transform_indices = @transform_3, window_bounds = array<i64: 8, 128>}, {transform_indices = @transform_4, window_bounds = array<i64: 1, 8, 128>}, {pipeline_mode = #tpu.pipeline_mode<synchronous>, transform_indices = @transform_5, window_bounds = array<i64: 8, 128>}]} {
    %c0_i32 = arith.constant 0 : i32
    %0 = arith.cmpi eq, %arg0, %c0_i32 : i32
    %1 = arith.extui %0 : i1 to i32
    %c0_i32_0 = arith.constant 0 : i32
    %2 = arith.cmpi ne, %1, %c0_i32_0 : i32
    scf.if %2 {
      %c0_24 = arith.constant 0 : index
      %c0_25 = arith.constant 0 : index
      %48 = vector.load %arg3[%c0_24, %c0_25] : memref<8x128xf32, #tpu.memory_space<vmem>>, vector<8x128xf32>
      %c0_26 = arith.constant 0 : index
      %c0_27 = arith.constant 0 : index
      %49 = vector.load %arg7[%c0_26, %c0_27] : memref<8x128xf32, #tpu.memory_space<vmem>>, vector<8x128xf32>
      tpu.vector_store %arg7[%c0_26, %c0_27], %48 {strides = array<i32>} : memref<8x128xf32, #tpu.memory_space<vmem>>, vector<8x128xf32>,
      %c0_28 = arith.constant 0 : index
      %c0_29 = arith.constant 0 : index
      %50 = vector.load %arg4[%c0_28, %c0_29] : memref<8x128xf32, #tpu.memory_space<vmem>>, vector<8x128xf32>
      %c0_30 = arith.constant 0 : index
      %c0_31 = arith.constant 0 : index
      %51 = vector.load %arg6[%c0_30, %c0_31] : memref<8x128xf32, #tpu.memory_space<vmem>>, vector<8x128xf32>
      tpu.vector_store %arg6[%c0_30, %c0_31], %50 {strides = array<i32>} : memref<8x128xf32, #tpu.memory_space<vmem>>, vector<8x128xf32>,
    } else {
    }
    %c0 = arith.constant 0 : index
    %c0_1 = arith.constant 0 : index
    %3 = vector.load %arg7[%c0, %c0_1] : memref<8x128xf32, #tpu.memory_space<vmem>>, vector<8x128xf32>
    %c0_2 = arith.constant 0 : index
    %c0_3 = arith.constant 0 : index
    %4 = vector.load %arg6[%c0_2, %c0_3] : memref<8x128xf32, #tpu.memory_space<vmem>>, vector<8x128xf32>
    %c0_i32_4 = arith.constant 0 : i32
    %c0_5 = arith.constant 0 : index
    %c0_6 = arith.constant 0 : index
    %5 = vector.load %arg2[%c0_5, %c0_6] : memref<128x512xf32, #tpu.memory_space<vmem>>, vector<128x512xf32>
    %cst = arith.constant dense<0.000000e+00> : vector<8x512xf32>
    %6 = tpu.matmul %3, %5, %cst {dimension_numbers = #tpu.dot_dimension_numbers<[1], [0], [0], [1], [0, 0, 1, 1], [], []>} : vector<8x128xf32>, vector<128x512xf32>, vector<8x512xf32> -> vector<8x512xf32>
    %7 = arith.index_cast %c0_i32_4 : i32 to index
    %c0_7 = arith.constant 0 : index
    %c0_8 = arith.constant 0 : index
    %8 = vector.load %arg1[%7, %c0_7, %c0_8] : memref<1x8x512xf32, #tpu.memory_space<vmem>>, vector<1x8x512xf32>
    %9 = vector.shape_cast %8 : vector<1x8x512xf32> to vector<8x512xf32>
    %10 = arith.addf %6, %9 : vector<8x512xf32>
    %11 = vector.extract_strided_slice %10 {offsets = [0, 0], sizes = [8, 128], strides = [1, 1]} : vector<8x512xf32> to vector<8x128xf32>
    %cst_9 = arith.constant 5.000000e-01 : f32
    %12 = vector.broadcast %cst_9 : f32 to vector<8x128xf32>
    %13 = arith.mulf %12, %11 : vector<8x128xf32>
    %14 = math.tanh %13 : vector<8x128xf32>
    %cst_10 = arith.constant 1.000000e+00 : f32
    %15 = vector.broadcast %cst_10 : f32 to vector<8x128xf32>
    %16 = arith.addf %14, %15 : vector<8x128xf32>
    %cst_11 = arith.constant 5.000000e-01 : f32
    %17 = vector.broadcast %cst_11 : f32 to vector<8x128xf32>
    %18 = arith.mulf %17, %16 : vector<8x128xf32>
    %19 = vector.extract_strided_slice %10 {offsets = [0, 128], sizes = [8, 128], strides = [1, 1]} : vector<8x512xf32> to vector<8x128xf32>
    %cst_12 = arith.constant 5.000000e-01 : f32
    %20 = vector.broadcast %cst_12 : f32 to vector<8x128xf32>
    %21 = arith.mulf %20, %19 : vector<8x128xf32>
    %22 = math.tanh %21 : vector<8x128xf32>
    %cst_13 = arith.constant 1.000000e+00 : f32
    %23 = vector.broadcast %cst_13 : f32 to vector<8x128xf32>
    %24 = arith.addf %22, %23 : vector<8x128xf32>
    %cst_14 = arith.constant 5.000000e-01 : f32
    %25 = vector.broadcast %cst_14 : f32 to vector<8x128xf32>
    %26 = arith.mulf %25, %24 : vector<8x128xf32>
    %27 = vector.extract_strided_slice %10 {offsets = [0, 256], sizes = [8, 128], strides = [1, 1]} : vector<8x512xf32> to vector<8x128xf32>
    %cst_15 = arith.constant 5.000000e-01 : f32
    %28 = vector.broadcast %cst_15 : f32 to vector<8x128xf32>
    %29 = arith.mulf %28, %27 : vector<8x128xf32>
    %30 = math.tanh %29 : vector<8x128xf32>
    %cst_16 = arith.constant 1.000000e+00 : f32
    %31 = vector.broadcast %cst_16 : f32 to vector<8x128xf32>
    %32 = arith.addf %30, %31 : vector<8x128xf32>
    %cst_17 = arith.constant 5.000000e-01 : f32
    %33 = vector.broadcast %cst_17 : f32 to vector<8x128xf32>
    %34 = arith.mulf %33, %32 : vector<8x128xf32>
    %35 = vector.extract_strided_slice %10 {offsets = [0, 384], sizes = [8, 128], strides = [1, 1]} : vector<8x512xf32> to vector<8x128xf32>
    %36 = math.tanh %35 : vector<8x128xf32>
    %37 = arith.mulf %26, %4 : vector<8x128xf32>
    %38 = arith.mulf %18, %36 : vector<8x128xf32>
    %39 = arith.addf %37, %38 : vector<8x128xf32>
    %40 = math.tanh %39 : vector<8x128xf32>
    %41 = arith.mulf %34, %40 : vector<8x128xf32>
    %42 = arith.index_cast %c0_i32_4 : i32 to index
    %c0_18 = arith.constant 0 : index
    %c0_19 = arith.constant 0 : index
    %43 = vector.load %arg5[%42, %c0_18, %c0_19] : memref<1x8x128xf32, #tpu.memory_space<vmem>>, vector<1x8x128xf32>
    %44 = vector.shape_cast %43 : vector<1x8x128xf32> to vector<8x128xf32>
    %45 = vector.shape_cast %41 : vector<8x128xf32> to vector<1x8x128xf32>
    tpu.vector_store %arg5[%42, %c0_18, %c0_19], %45 {strides = array<i32>} : memref<1x8x128xf32, #tpu.memory_space<vmem>>, vector<1x8x128xf32>,
    %c1_i32 = arith.constant 1 : i32
    %c0_20 = arith.constant 0 : index
    %c0_21 = arith.constant 0 : index
    %46 = vector.load %arg7[%c0_20, %c0_21] : memref<8x128xf32, #tpu.memory_space<vmem>>, vector<8x128xf32>
    tpu.vector_store %arg7[%c0_20, %c0_21], %41 {strides = array<i32>} : memref<8x128xf32, #tpu.memory_space<vmem>>, vector<8x128xf32>,
    %c0_22 = arith.constant 0 : index
    %c0_23 = arith.constant 0 : index
    %47 = vector.load %arg6[%c0_22, %c0_23] : memref<8x128xf32, #tpu.memory_space<vmem>>, vector<8x128xf32>
    tpu.vector_store %arg6[%c0_22, %c0_23], %39 {strides = array<i32>} : memref<8x128xf32, #tpu.memory_space<vmem>>, vector<8x128xf32>,
    return
  }
  func.func @transform_0(%arg0: i32) -> (i32, i32, i32) {
    %c0_i32 = arith.constant 0 : i32
    %c0_i32_0 = arith.constant 0 : i32
    %c0_i32_1 = arith.constant 0 : i32
    return %arg0, %c0_i32, %c0_i32_0 : i32, i32, i32
  }
  func.func @transform_1(%arg0: i32) -> (i32, i32) {
    %c0_i32 = arith.constant 0 : i32
    %c0_i32_0 = arith.constant 0 : i32
    %c0_i32_1 = arith.constant 0 : i32
    return %c0_i32, %c0_i32_0 : i32, i32
  }
  func.func @transform_2(%arg0: i32) -> (i32, i32) {
    %c0_i32 = arith.constant 0 : i32
    %c0_i32_0 = arith.constant 0 : i32
    %c0_i32_1 = arith.constant 0 : i32
    return %c0_i32, %c0_i32_0 : i32, i32
  }
  func.func @transform_3(%arg0: i32) -> (i32, i32) {
    %c0_i32 = arith.constant 0 : i32
    %c0_i32_0 = arith.constant 0 : i32
    %c0_i32_1 = arith.constant 0 : i32
    return %c0_i32, %c0_i32_0 : i32, i32
  }
  func.func @transform_4(%arg0: i32) -> (i32, i32, i32) {
    %c0_i32 = arith.constant 0 : i32
    %c0_i32_0 = arith.constant 0 : i32
    %c0_i32_1 = arith.constant 0 : i32
    return %arg0, %c0_i32, %c0_i32_0 : i32, i32, i32
  }
  func.func @transform_5(%arg0: i32) -> (i32, i32) {
    %c0_i32 = arith.constant 0 : i32
    %c0_i32_0 = arith.constant 0 : i32
    %c0_i32_1 = arith.constant 0 : i32
    return %c0_i32, %c0_i32_0 : i32, i32
  }
}

</mosaic_0001>

<bundles_post_ra>
// kernel: lstm_sequence.1
= control target key start
LH: loop header
LB: loop body
LE: loop exit
PB: predicated region body
PF: predicated region fallthrough
CT: control target
= control target key end

     0   :  { %11 = vsyncpa [#allocation4], 0  ;;  %s547_s0 = inlined_call_operand.vmem [shape: f32[1,8,512], index: 0, kind: input, shape index: {}]   ;;  %s548_s1 = inlined_call_operand.hbm [shape: f32[128,512], index: 1, kind: input, shape index: {}]   ;;  %s549_s2 = inlined_call_operand.vmem [shape: f32[8,128], index: 2, kind: input, shape index: {}]   ;;  %s550_s3 = inlined_call_operand.vmem [shape: f32[8,128], index: 3, kind: input, shape index: {}]   ;;  %s551_s4 = inlined_call_operand.hbm [shape: f32[1,8,128], index: 4, kind: output, shape index: {0}]   ;;  %s552_s5 = inlined_call_operand.hbm [shape: f32[8,128], index: 5, kind: output, shape index: {1}]  }
   0x1   :  { %12 = vsyncpa [#allocation5], 0 }
   0x2   :  { %13 = vsyncpa [#allocation8], 0  ;;  %s457_s18 = smov [#allocation3]   ;;  %s385_s22 = scalar_lea.hbm %s548_s1, 8192 }
   0x3   :  { %s21_s19 = sshll.u32 %s457_s18, 4  ;;  %p386_p0 = scmp.ne.s32.totalorder %s548_s1, %s385_s22  ;;  %s22_s19 = int_to_ptr.vmem [resolvable:$true] %s21_s19 }
   0x4   :  { %p389_p1 = scmp.lt.u32.totalorder %s385_s22, %s548_s1 }
   0x6   :  { %p391_p2 = pnand %p389_p1, %p386_p0 }
   0x8   :  { %394 = shalt.err (!%p391_p2)
}
   0x9   :  { %s395_s27 = scalar_lea.vmem %s22_s19, 8192  ;;  %p400_p4 = scmp.lt.s32.totalorder %s22_s19, %s22_s19 }
   0xa   :  { %p396_p3 = scmp.ne.s32.totalorder %s22_s19, %s395_s27  ;;  %p401_p5 = scmp.lt.s32.totalorder %s395_s27, %s395_s27 }
   0xc   :  { %p402_p6 = por %p401_p5, %p400_p4 }
   0xe   :  { %p403_p7 = pnand %p402_p6, %p396_p3 }
  0x10   :  { %406 = shalt.err (!%p403_p7)
}
  0x11   :  { %s458_s28 = smov 512   ;;  %s459_s29 = smov 32  }
  0x12   :  { %27 = dma.hbm_to_vmem [thread:$0]  %s548_s1, 8192, %s22_s19, [#allocation4], %s458_s28, %s458_s28, %s459_s29  }
  0x13   :  { %451 = dma.done.wait [#allocation4], 8192  }
  0x14   :  { %452 = vsyncadd [#allocation4], 4294959104  ;;  %v460_v0 = vmov 0.0   ;;  %v46_v1 = vld [vmem:[#allocation3 + $0x8] sm:$0xff]  ;;  %v45_v3 = vld [vmem:[#allocation3] sm:$0xff]  ;;  %s461_s17 = smov [#allocation7]  }
  0x15   :  { %177 = vmatprep.mubr.f32.mxu0 %v460_v0  ;;  %248 = vmatprep.mubr.f32.mxu1 %v460_v0  ;;  %v50_v2 = vld [vmem:[#allocation3 + $0x28] sm:$0xff]  ;;  %v49_v5 = vld [vmem:[#allocation3 + $0x20] sm:$0xff]  ;;  %v48_v12 = vld [vmem:[#allocation3 + $0x18] sm:$0xff]  ;;  %s292_s18 = sshll.u32 %s461_s17, 4  ;;  %s293_s18 = int_to_ptr.vmem [resolvable:$true] %s292_s18 }
  0x16   :  { %v305_v4 = vpack.c.bf16 %v50_v2, %v46_v1  ;;  %v54_v6 = vld [vmem:[#allocation3 + $0x48] sm:$0xff]  ;;  %v307_v8 = vpack.c.bf16 %v49_v5, %v45_v3  ;;  %v53_v10 = vld [vmem:[#allocation3 + $0x40] sm:$0xff]  ;;  %v52_v13 = vld [vmem:[#allocation3 + $0x38] sm:$0xff]  ;;  %p412_p9 = scmp.lt.s32.totalorder %s293_s18, %s293_s18 }
  0x17   :  { %v58_v7 = vld [vmem:[#allocation3 + $0x68] sm:$0xff]  ;;  %v57_v11 = vld [vmem:[#allocation3 + $0x60] sm:$0xff]  ;;  %v47_v14 = vld [vmem:[#allocation3 + $0x10] sm:$0xff]  ;;  %v337_v17 = vpack.c.bf16 %v52_v13, %v48_v12 }
  0x18   :  { %v309_v9 = vpack.c.bf16 %v58_v7, %v54_v6  ;;  %306 = vmatprep.subr.bf16.mxu0 %v305_v4  ;;  %v51_v15 = vld [vmem:[#allocation3 + $0x30] sm:$0xff]  ;;  %v311_v16 = vpack.c.bf16 %v57_v11, %v53_v10  ;;  %v62_v19 = vld [vmem:[#allocation3 + $0x88] sm:$0xff]  ;;  %v61_v21 = vld [vmem:[#allocation3 + $0x80] sm:$0xff] }
  0x19   :  { %308 = vmatpush1.bf16.msra.mxu0 %v307_v8  ;;  %v339_v18 = vpack.c.bf16 %v51_v15, %v47_v14  ;;  %v66_v20 = vld [vmem:[#allocation3 + $0xa8] sm:$0xff]  ;;  %v65_v23 = vld [vmem:[#allocation3 + $0xa0] sm:$0xff]  ;;  %v56_v24 = vld [vmem:[#allocation3 + $0x58] sm:$0xff]  ;;  %338 = vmatprep.subr.bf16.mxu1 %v337_v17 }
  0x1a   :  { %310 = vmatprep.subr.bf16.mxu0 %v309_v9  ;;  %v313_v22 = vpack.c.bf16 %v66_v20, %v62_v19  ;;  %v60_v25 = vld [vmem:[#allocation3 + $0x78] sm:$0xff]  ;;  %v55_v27 = vld [vmem:[#allocation3 + $0x50] sm:$0xff]  ;;  %v70_v29 = vld [vmem:[#allocation3 + $0xc8] sm:$0xff]  ;;  %v315_v32 = vpack.c.bf16 %v65_v23, %v61_v21 }
  0x1b   :  { %v341_v26 = vpack.c.bf16 %v60_v25, %v56_v24  ;;  %v59_v28 = vld [vmem:[#allocation3 + $0x70] sm:$0xff]  ;;  %340 = vmatpush1.bf16.msra.mxu1 %v339_v18  ;;  %v74_v31 = vld [vmem:[#allocation3 + $0xe8] sm:$0xff]  ;;  %v64_v33 = vld [vmem:[#allocation3 + $0x98] sm:$0xff] }
  0x1c   :  { %v343_v30 = vpack.c.bf16 %v59_v28, %v55_v27  ;;  %v68_v34 = vld [vmem:[#allocation3 + $0xb8] sm:$0xff]  ;;  %v63_v35 = vld [vmem:[#allocation3 + $0x90] sm:$0xff]  ;;  %v317_v36 = vpack.c.bf16 %v74_v31, %v70_v29  ;;  %v69_v37 = vld [vmem:[#allocation3 + $0xc0] sm:$0xff] }
  0x1d   :  { %312 = vmatpush1.bf16.msra.mxu0 %v311_v16  ;;  %342 = vmatprep.subr.bf16.mxu1 %v341_v26  ;;  %v73_v38 = vld [vmem:[#allocation3 + $0xe0] sm:$0xff]  ;;  %v345_v39 = vpack.c.bf16 %v68_v34, %v64_v33  ;;  %v67_v40 = vld [vmem:[#allocation3 + $0xb0] sm:$0xff]  ;;  %v78_v41 = vld [vmem:[#allocation3 + $0x108] sm:$0xff] }
  0x1e   :  { %314 = vmatprep.subr.bf16.mxu0 %v313_v22  ;;  %v82_v42 = vld [vmem:[#allocation3 + $0x128] sm:$0xff]  ;;  %v72_v43 = vld [vmem:[#allocation3 + $0xd8] sm:$0xff]  ;;  %v347_v44 = vpack.c.bf16 %v67_v40, %v63_v35  ;;  %v319_v46 = vpack.c.bf16 %v73_v38, %v69_v37  ;;  %v77_v47 = vld [vmem:[#allocation3 + $0x100] sm:$0xff] }
  0x1f   :  { %344 = vmatpush1.bf16.msra.mxu1 %v343_v30  ;;  %v76_v45 = vld [vmem:[#allocation3 + $0xf8] sm:$0xff]  ;;  %v71_v49 = vld [vmem:[#allocation3 + $0xd0] sm:$0xff]  ;;  %v321_v51 = vpack.c.bf16 %v82_v42, %v78_v41  ;;  %v81_v52 = vld [vmem:[#allocation3 + $0x120] sm:$0xff] }
  0x20   :  { %346 = vmatprep.subr.bf16.mxu1 %v345_v39  ;;  %v349_v48 = vpack.c.bf16 %v76_v45, %v72_v43  ;;  %v75_v50 = vld [vmem:[#allocation3 + $0xf0] sm:$0xff]  ;;  %v80_v53 = vld [vmem:[#allocation3 + $0x118] sm:$0xff]  ;;  %v86_v55 = vld [vmem:[#allocation3 + $0x148] sm:$0xff]  ;;  %v323_v58 = vpack.c.bf16 %v81_v52, %v77_v47 }
  0x21   :  { %316 = vmatpush1.bf16.msra.mxu0 %v315_v32  ;;  %v84_v54 = vld [vmem:[#allocation3 + $0x138] sm:$0xff]  ;;  %v90_v56 = vld [vmem:[#allocation3 + $0x168] sm:$0xff]  ;;  %v351_v57 = vpack.c.bf16 %v75_v50, %v71_v49  ;;  %v85_v59 = vld [vmem:[#allocation3 + $0x140] sm:$0xff] }
  0x22   :  { %318 = vmatprep.subr.bf16.mxu0 %v317_v36  ;;  %v353_v60 = vpack.c.bf16 %v84_v54, %v80_v53  ;;  %v79_v61 = vld [vmem:[#allocation3 + $0x110] sm:$0xff]  ;;  %v325_v63 = vpack.c.bf16 %v90_v56, %v86_v55  ;;  %v89_v0 = vld [vmem:[#allocation3 + $0x160] sm:$0xff]  ;;  %v88_v1 = vld [vmem:[#allocation3 + $0x158] sm:$0xff] }
  0x23   :  { %348 = vmatpush1.bf16.msra.mxu1 %v347_v44  ;;  %v83_v62 = vld [vmem:[#allocation3 + $0x130] sm:$0xff]  ;;  %v92_v2 = vld [vmem:[#allocation3 + $0x178] sm:$0xff]  ;;  %v94_v3 = vld [vmem:[#allocation3 + $0x188] sm:$0xff]  ;;  %v327_v6 = vpack.c.bf16 %v89_v0, %v85_v59 }
  0x24   :  { %350 = vmatprep.subr.bf16.mxu1 %v349_v48  ;;  %v98_v4 = vld [vmem:[#allocation3 + $0x1a8] sm:$0xff]  ;;  %v355_v5 = vpack.c.bf16 %v83_v62, %v79_v61  ;;  %v93_v7 = vld [vmem:[#allocation3 + $0x180] sm:$0xff]  ;;  %v357_v8 = vpack.c.bf16 %v92_v2, %v88_v1  ;;  %v87_v9 = vld [vmem:[#allocation3 + $0x150] sm:$0xff] }
  0x25   :  { %320 = vmatpush1.bf16.msra.mxu0 %v319_v46  ;;  %v91_v10 = vld [vmem:[#allocation3 + $0x170] sm:$0xff]  ;;  %v329_v11 = vpack.c.bf16 %v98_v4, %v94_v3  ;;  %v97_v12 = vld [vmem:[#allocation3 + $0x1a0] sm:$0xff]  ;;  %v96_v13 = vld [vmem:[#allocation3 + $0x198] sm:$0xff] }
  0x26   :  { %322 = vmatprep.subr.bf16.mxu0 %v321_v51  ;;  %v100_v14 = vld [vmem:[#allocation3 + $0x1b8] sm:$0xff]  ;;  %v102_v15 = vld [vmem:[#allocation3 + $0x1c8] sm:$0xff]  ;;  %v359_v17 = vpack.c.bf16 %v91_v10, %v87_v9  ;;  %v331_v18 = vpack.c.bf16 %v97_v12, %v93_v7  ;;  %v101_v19 = vld [vmem:[#allocation3 + $0x1c0] sm:$0xff] }
  0x27   :  { %352 = vmatpush1.bf16.msra.mxu1 %v351_v57  ;;  %v106_v16 = vld [vmem:[#allocation3 + $0x1e8] sm:$0xff]  ;;  %v361_v20 = vpack.c.bf16 %v100_v14, %v96_v13  ;;  %v95_v21 = vld [vmem:[#allocation3 + $0x190] sm:$0xff]  ;;  %v105_v24 = vld [vmem:[#allocation3 + $0x1e0] sm:$0xff] }
  0x28   :  { %354 = vmatprep.subr.bf16.mxu1 %v353_v60  ;;  %v99_v22 = vld [vmem:[#allocation3 + $0x1b0] sm:$0xff]  ;;  %v333_v23 = vpack.c.bf16 %v106_v16, %v102_v15  ;;  %v104_v25 = vld [vmem:[#allocation3 + $0x1d8] sm:$0xff]  ;;  %v335_v28 = vpack.c.bf16 %v105_v24, %v101_v19  ;;  %v39_v33 = vld [vmem:[%s549_s2] sm:$0xff] }
  0x29   :  { %324 = vmatpush1.bf16.msra.mxu0 %v323_v58  ;;  %v108_v26 = vld [vmem:[#allocation3 + $0x1f8] sm:$0xff]  ;;  %v363_v27 = vpack.c.bf16 %v99_v22, %v95_v21  ;;  %v103_v30 = vld [vmem:[#allocation3 + $0x1d0] sm:$0xff]  ;;  %v109_v34 = vld [vmem:[%s547_s0] sm:$0xff] }
  0x2a   :  { %326 = vmatprep.subr.bf16.mxu0 %v325_v63  ;;  %v365_v29 = vpack.c.bf16 %v108_v26, %v104_v25  ;;  %v107_v31 = vld [vmem:[#allocation3 + $0x1f0] sm:$0xff]  ;;  %v110_v35 = vld [vmem:[%s547_s0 + $0x8] sm:$0xff]  ;;  %v112_v40 = vld [vmem:[%s547_s0 + $0x18] sm:$0xff] }
  0x2b   :  { %356 = vmatpush1.bf16.msra.mxu1 %v355_v5  ;;  %v367_v32 = vpack.c.bf16 %v107_v31, %v103_v30  ;;  %v111_v46 = vld [vmem:[%s547_s0 + $0x10] sm:$0xff]  ;;  %v41_v55 = vld [vmem:[%s550_s3] sm:$0xff]  ;;  %s407_s0 = scalar_lea.vmem %s293_s18, 128 }
  0x2c   :  { %358 = vmatprep.subr.bf16.mxu1 %v357_v8  ;;  %p408_p8 = scmp.ne.s32.totalorder %s293_s18, %s407_s0  ;;  %p413_p10 = scmp.lt.s32.totalorder %s407_s0, %s407_s0 }
  0x2d   :  { %328 = vmatpush1.bf16.msra.mxu0 %v327_v6 }
  0x2e   :  { %330 = vmatprep.subr.bf16.mxu0 %v329_v11  ;;  %p414_p11 = por %p413_p10, %p412_p9 }
  0x2f   :  { %360 = vmatpush1.bf16.msra.mxu1 %v359_v17 }
  0x30   :  { %362 = vmatprep.subr.bf16.mxu1 %v361_v20  ;;  %p415_p12 = pnand %p414_p11, %p408_p8 }
  0x31   :  { %332 = vmatpush1.bf16.msra.mxu0 %v331_v18 }
  0x32   :  { %334 = vmatprep.subr.bf16.mxu0 %v333_v23 }
  0x33   :  { %364 = vmatpush1.bf16.msra.mxu1 %v363_v27 }
  0x34   :  { %366 = vmatprep.subr.bf16.mxu1 %v365_v29 }
  0x35   :  { %336 = vmatpush1.bf16.msra.mxu0 %v335_v28 }
  0x37   :  { %368 = vmatpush1.bf16.msra.mxu1 %v367_v32 }
  0x38   :  { %178 = vmatmul.mubr.f32.vlgmr.msra.gmra.mrb[0].mxu0 %v39_v33 }
  0x3a   :  { %249 = vmatmul.mubr.f32.vlgmr.msra.gmra.mrb[0].mxu1 %v39_v33 }
 0x10b   :  { %v179_v36 = vpop.f32.mrb[0].mxu0 }
 0x10c   :  { %v180_v37 = vadd.f32 %v179_v36, %v109_v34  ;;  %v181_v38 = vpop.f32.mrb[1].mxu0 }
 0x10d   :  { %v182_v39 = vadd.f32 %v181_v38, %v110_v35  ;;  %v250_v42 = vpop.f32.mrb[0].mxu1 }
 0x10e   :  { %v255_v41 = vmul.f32 0.5, %v180_v37  ;;  %v252_v44 = vpop.f32.mrb[1].mxu1  ;;  %v251_v47 = vadd.f32 %v250_v42, %v111_v46 }
 0x10f   :  { %v259_v43 = vmul.f32 0.5, %v182_v39  ;;  %v253_v45 = vadd.f32 %v252_v44, %v112_v40 }
 0x110   :  { %375 = vtanh.f32 %v255_v41  ;;  %v263_v48 = vmul.f32 0.5, %v251_v47 }
 0x111   :  { %377 = vtanh.f32 %v259_v43 }
 0x112   :  { %379 = vtanh.f32 %v253_v45 }
 0x113   :  { %381 = vtanh.f32 %v263_v48 }
 0x11a   :  { %v376_v49 = vpop.eup %375 }
 0x11b   :  { %v378_v50 = vpop.eup %377  ;;  %v257_v51 = vadd.f32 1.0, %v376_v49 }
 0x11c   :  { %v380_v52 = vpop.eup %379  ;;  %v261_v53 = vadd.f32 1.0, %v378_v50 }
 0x11d   :  { %v258_v54 = vmul.f32 0.5, %v257_v51 }
 0x11e   :  { %v262_v56 = vmul.f32 0.5, %v261_v53 }
 0x11f   :  { %v269_v57 = vmul.f32 %v380_v52, %v258_v54 }
 0x120   :  { %v268_v58 = vmul.f32 %v262_v56, %v41_v55 }
 0x122   :  { %v270_v59 = vadd.f32 %v269_v57, %v268_v58 }
 0x124   :  { %275 = vst [vmem:[#allocation7] sm:$0xff] %v270_v59  ;;  %383 = vtanh.f32 %v270_v59 }
 0x125   :  { %418 = shalt.err (!%p415_p12)
}
 0x126   :  { %s419_s3 = scalar_lea.hbm %s552_s5, 128 }
 0x127   :  { %p420_p13 = scmp.ne.s32.totalorder %s552_s5, %s419_s3  ;;  %p423_p0 = scmp.lt.u32.totalorder %s419_s3, %s552_s5 }
 0x129   :  { %p425_p1 = pnand %p423_p0, %p420_p13 }
 0x12b   :  { %428 = shalt.err (!%p425_p1)
}
 0x12c   :  { %295 = dma.vmem_to_hbm [thread:$0]  %s293_s18, 128, %s552_s5, [#allocation8]   ;;  %v382_v60 = vpop.eup %381 }
 0x12d   :  { %v265_v61 = vadd.f32 1.0, %v382_v60  ;;  %s462_s27 = smov [#allocation6]  }
 0x12e   :  { %s282_s28 = sshll.u32 %s462_s27, 4  ;;  %v384_v63 = vpop.eup %383  ;;  %s283_s28 = int_to_ptr.vmem [resolvable:$true] %s282_s28 }
 0x12f   :  { %v266_v62 = vmul.f32 0.5, %v265_v61  ;;  %s429_s29 = scalar_lea.vmem %s283_s28, 128  ;;  %p434_p3 = scmp.lt.s32.totalorder %s283_s28, %s283_s28 }
 0x130   :  { %p430_p2 = scmp.ne.s32.totalorder %s283_s28, %s429_s29  ;;  %p435_p4 = scmp.lt.s32.totalorder %s429_s29, %s429_s29 }
 0x131   :  { %v272_v0 = vmul.f32 %v384_v63, %v266_v62 }
 0x132   :  { %p436_p5 = por %p435_p4, %p434_p3 }
 0x133   :  { %273 = vst [vmem:[#allocation6] sm:$0xff] %v272_v0 }
 0x134   :  { %p437_p6 = pnand %p436_p5, %p430_p2 }
 0x136   :  { %440 = shalt.err (!%p437_p6)
}
 0x137   :  { %s441_s5 = scalar_lea.hbm %s551_s4, 128 }
 0x138   :  { %p442_p7 = scmp.ne.s32.totalorder %s551_s4, %s441_s5  ;;  %p445_p8 = scmp.lt.u32.totalorder %s441_s5, %s551_s4 }
 0x13a   :  { %p447_p9 = pnand %p445_p8, %p442_p7 }
 0x13c   :  { %450 = shalt.err (!%p447_p9)
}
 0x13d   :  { %285 = dma.vmem_to_hbm [thread:$0]  %s283_s28, 128, %s551_s4, [#allocation5]  }
 0x13e   :  { %453 = dma.done.wait [#allocation5], 128  }
 0x13f   :  { %454 = vsyncadd [#allocation5], 4294967168 }
 0x140   :  { %455 = dma.done.wait [#allocation8], 128  }
 0x141   :  { %456 = vsyncadd [#allocation8], 4294967168 }
 0x142   :  { %302 = vsyncpa [#allocation4], 1 }
 0x143   :  { %303 = vsyncpa [#allocation5], 1 }
 0x144   :  { %304 = vsyncpa [#allocation8], 1 }

</bundles_post_ra>
